<compile_context>
chip_gen: v5e
topology: v5e:2x2
jax: 0.10.0
libtpu: 0.0.40
codegen_flags: <defaults>
</compile_context>

<pallas_src>
import jax
import jax.numpy as jnp
from jax.experimental import pallas as pl
from jax.experimental.pallas import tpu as pltpu


def _round_up(x, m):
    return ((x + m - 1) // m) * m


# ---------------------------------------------------------------------------
# Fused Pallas kernel
# ---------------------------------------------------------------------------
def _mish_f32(y):
    # Mish(y) = y * tanh(softplus(y)).  With a = exp(-|y|):
    #   y >= 0: tanh(log(1+e^y)) = (2a+1) / (2a^2+2a+1)
    #   y <  0: tanh(log(1+e^y)) = (a^2+2a) / (a^2+2a+2)
    # -> one EUP exp + one (approx) EUP reciprocal, rest on the VPU.
    a = jnp.exp(-jnp.abs(y))
    u = a * (a + 2.0)
    pos = y >= 0.0
    num = jnp.where(pos, 2.0 * a + 1.0, u)
    den = jnp.where(pos, u + a * a + 1.0, u + 2.0)
    return y * num * pl.reciprocal(den, approx=True)


def _csp_fused_kernel(p_ref, wb_ref, bb_ref, wpt_ref, bpt_ref, wf_ref, bf_ref,
                      o_ref):
    """All matmuls are (Cout, Cin) @ (Cin, tm) so M (pixels) stays on lanes."""

    def conv_bn_mish(w_ref, b_ref, x_bf16):
        acc = jnp.dot(w_ref[...], x_bf16, preferred_element_type=jnp.float32)
        return _mish_f32(acc + b_ref[...])          # bias: folded BN, f32

    # base_layer: 3x3 conv as a matmul over pre-extracted patch columns.
    xb = conv_bn_mish(wb_ref, bb_ref, p_ref[...])                 # (planes, tm)
    # stage_layers: identity (see TODO at top of file), so both partial
    # transitions consume xb.  partial_transition2 / partial_transition1 and
    # torch.cat([out2, out1], dim=1) collapse into ONE stacked matmul.
    cat = conv_bn_mish(wpt_ref, bpt_ref, xb.astype(jnp.bfloat16))  # (C2+C1, tm)
    # fuse_transition
    out = conv_bn_mish(wf_ref, bf_ref, cat.astype(jnp.bfloat16))   # (planes, tm)
    o_ref[...] = out.astype(o_ref.dtype)


def _csp_fused_call(patches_T, wb, bb, wpt, bpt, wf, bf, *, tm=512):
    Kb, M = patches_T.shape
    Cb = wb.shape[0]
    Cpt = wpt.shape[0]
    Cf = wf.shape[0]

    # Lane-dense tile over M; pad only when M is below one 128-aligned tile.
    tm_eff = min(tm, _round_up(M, 128))
    Mp = max(M, tm_eff)
    if Mp != M:
        patches_T = jnp.pad(patches_T, ((0, 0), (0, Mp - M)))
    grid_m = pl.cdiv(Mp, tm_eff)

    out = pl.pallas_call(
        _csp_fused_kernel,
        out_shape=jax.ShapeDtypeStruct((Cf, Mp), jnp.float32),
        grid_spec=pltpu.PrefetchScalarGridSpec(
            num_scalar_prefetch=0,
            grid=(grid_m,),
            in_specs=[
                pl.BlockSpec((Kb, tm_eff), lambda i: (0, i)),   # patch columns
                pl.BlockSpec((Cb, Kb), lambda i: (0, 0)),       # base W (BN-scaled)
                pl.BlockSpec((Cb, 1), lambda i: (0, 0)),        # base bias
                pl.BlockSpec((Cpt, Cb), lambda i: (0, 0)),      # [W_pt2; W_pt1]
                pl.BlockSpec((Cpt, 1), lambda i: (0, 0)),       # [b_pt2; b_pt1]
                pl.BlockSpec((Cf, Cpt), lambda i: (0, 0)),      # fuse W
                pl.BlockSpec((Cf, 1), lambda i: (0, 0)),        # fuse bias
            ],
            out_specs=pl.BlockSpec((Cf, tm_eff), lambda i: (0, i)),
        ),
        compiler_params=pltpu.CompilerParams(
            dimension_semantics=("parallel",)),
    )(patches_T, wb, bb, wpt, bpt, wf, bf)
    return out if Mp == M else out[:, :M]


# ---------------------------------------------------------------------------
# Glue: channels-major im2col, BN folding, parameter construction
# ---------------------------------------------------------------------------
def im2col_T(x_nchw, kh, kw, stride, padding, dilation):
    """Return transposed patch matrix (kh*kw*Cin, N*Ho*Wo); row order (i,j,cin)."""
    N, C, H, W = x_nchw.shape
    xp = jnp.pad(x_nchw, ((0, 0), (0, 0), (padding, padding), (padding, padding)))
    Ho = (H + 2 * padding - dilation * (kh - 1) - 1) // stride + 1
    Wo = (W + 2 * padding - dilation * (kw - 1) - 1) // stride + 1
    rows = []
    for i in range(kh):
        for j in range(kw):
            hi, wj = i * dilation, j * dilation
            tap = xp[:, :, hi:hi + stride * (Ho - 1) + 1:stride,
                           wj:wj + stride * (Wo - 1) + 1:stride]   # (N, C, Ho, Wo)
            rows.append(jnp.transpose(tap, (1, 0, 2, 3)).reshape(C, N * Ho * Wo))
    return jnp.concatenate(rows, axis=0), (N, Ho, Wo)


def _conv_norm_act_params(key, cin, cout, ksize, eps=1e-4):
    kw_, kg, kb, km, kv = jax.random.split(key, 5)
    # PyTorch Conv2d weight layout (Cout, Cin, kh, kw), bias=False.
    w = 0.1 * jax.random.normal(kw_, (cout, cin, ksize, ksize), jnp.float32)
    # matmul layout (Cout, K) with K ordered (kh, kw, cin) to match im2col_T.
    w_mat = jnp.transpose(w, (0, 2, 3, 1)).reshape(cout, ksize * ksize * cin)
    gamma = jax.random.uniform(kg, (cout,), jnp.float32, 0.5, 1.5)
    beta = 0.1 * jax.random.normal(kb, (cout,), jnp.float32)
    mean = 0.1 * jax.random.normal(km, (cout,), jnp.float32)
    var = jax.random.uniform(kv, (cout,), jnp.float32, 0.5, 1.5)
    scale = gamma / jnp.sqrt(var + eps)          # module uses eps=0.0001
    bias = beta - mean * scale
    # Fold the per-output-channel BN scale into the weight rows.
    return {"w": w_mat * scale[:, None], "b": bias}


def make_params(key, inplanes, planes, is_csp_first_stage=True):
    k1, k2, k3, k4 = jax.random.split(key, 4)
    pt_ch = planes if is_csp_first_stage else inplanes
    fuse_in = planes * 2 if is_csp_first_stage else planes
    return {
        "base": _conv_norm_act_params(k1, inplanes, planes, 3),
        "pt1": _conv_norm_act_params(k2, planes, pt_ch, 1),
        "pt2": _conv_norm_act_params(k3, pt_ch, pt_ch, 1),
        "fuse": _conv_norm_act_params(k4, fuse_in, planes, 1),
    }


# ---------------------------------------------------------------------------
# Forward pass (matches PyTorch CrossStagePartialBlock.forward)
# ---------------------------------------------------------------------------
def cross_stage_partial_block_pallas(x_nchw, params, *, dilation=1, stride=2,
                                     tm=512):
    planes = params["base"]["w"].shape[0]
    bf16 = jnp.bfloat16

    # base_layer: 3x3 conv, stride, padding=dilation, dilation -> patch columns.
    pT, (N, Ho, Wo) = im2col_T(x_nchw.astype(bf16), 3, 3, stride, dilation,
                               dilation)

    # identity stage_layers: both partial transitions consume the base output.
    w1, b1 = params["pt1"]["w"], params["pt1"]["b"]
    w2, b2 = params["pt2"]["w"], params["pt2"]["b"]
    assert w1.shape[1] == planes and w2.shape[1] == planes, (
        "identity stage_layers requires the partial transitions to act on "
        "`planes` channels")
    # torch.cat([out2, out1], dim=1)  ->  stacked weight [W_pt2; W_pt1].
    wpt = jnp.concatenate([w2, w1], axis=0)
    bpt = jnp.concatenate([b2, b1], axis=0)

    out = _csp_fused_call(
        pT,
        params["base"]["w"].astype(bf16), params["base"]["b"][:, None],
        wpt.astype(bf16), bpt[:, None],
        params["fuse"]["w"].astype(bf16), params["fuse"]["b"][:, None],
        tm=tm)                                           # (planes, N*Ho*Wo)

    return jnp.transpose(out.reshape(planes, N, Ho, Wo), (1, 0, 2, 3))  # NCHW


# ---------------------------------------------------------------------------
# Pure-JAX reference (unfused, mirrors the PyTorch forward; exact Mish)
# ---------------------------------------------------------------------------
def _mish_exact(y):
    sp = jnp.maximum(y, 0.0) + jnp.log1p(jnp.exp(-jnp.abs(y)))
    return y * jnp.tanh(sp)


def cross_stage_partial_block_reference(x_nchw, params, *, dilation=1, stride=2):
    pT, (N, Ho, Wo) = im2col_T(x_nchw, 3, 3, stride, dilation, dilation)

    def layer(p, x):
        y = jnp.dot(p["w"].astype(jnp.bfloat16), x.astype(jnp.bfloat16),
                    preferred_element_type=jnp.float32) + p["b"][:, None]
        return _mish_exact(y)

    xb = layer(params["base"], pT)           # base_layer
    out1 = layer(params["pt1"], xb)          # partial_transition1
    x2 = xb                                  # stage_layers: identity (TODO above)
    out2 = layer(params["pt2"], x2)          # partial_transition2
    cat = jnp.concatenate([out2, out1], axis=0)
    out = layer(params["fuse"], cat)         # fuse_transition
    planes = out.shape[0]
    return jnp.transpose(out.reshape(planes, N, Ho, Wo), (1, 0, 2, 3))


# ---------------------------------------------------------------------------
if __name__ == "__main__":
    key = jax.random.PRNGKey(0)
    kx, kp = jax.random.split(key)

    # Small config consistent with the module:
    # inplanes=4, planes=8, stride=2, dilation=1, is_csp_first_stage=True
    N, inplanes, H, W = 2, 4, 16, 16
    planes = 8

    x = jax.random.normal(kx, (N, inplanes, H, W), jnp.float32)
    params = make_params(kp, inplanes, planes, is_csp_first_stage=True)

    out = cross_stage_partial_block_pallas(x, params)
    out = jax.block_until_ready(out)

    # silent sanity check against a pure-JAX reference of the same math
    # (same bf16 MXU operands; reference uses exact Mish vs. the kernel's
    #  approx-reciprocal Mish, hence the modest tolerance).
    ref = cross_stage_partial_block_reference(x, params)
    assert out.shape == (N, planes, H // 2, W // 2)
    assert jnp.allclose(out, ref, atol=2e-2, rtol=2e-2)

    print("KERNEL_OK")
</pallas_src>

<mosaic_0001>
module attributes {stable_mosaic.version = 11 : i64} {
  func.func @_csp_fused_kernel(%arg0: i32, %arg1: memref<36x128xbf16, #tpu.memory_space<vmem>>, %arg2: memref<8x36xbf16, #tpu.memory_space<vmem>>, %arg3: memref<8x1xf32, #tpu.memory_space<vmem>>, %arg4: memref<16x8xbf16, #tpu.memory_space<vmem>>, %arg5: memref<16x1xf32, #tpu.memory_space<vmem>>, %arg6: memref<8x16xbf16, #tpu.memory_space<vmem>>, %arg7: memref<8x1xf32, #tpu.memory_space<vmem>>, %arg8: memref<8x128xf32, #tpu.memory_space<vmem>>) attributes {dimension_semantics = [#tpu.dimension_semantics<parallel>], iteration_bounds = array<i64: 1>, scalar_prefetch = 0 : i64, scratch_operands = 0 : i64, tpu.core_type = #tpu.core_type<tc>, window_params = [{transform_indices = @transform_0, window_bounds = array<i64: 36, 128>}, {pipeline_mode = #tpu.pipeline_mode<synchronous>, transform_indices = @transform_1, window_bounds = array<i64: 8, 36>}, {pipeline_mode = #tpu.pipeline_mode<synchronous>, transform_indices = @transform_2, window_bounds = array<i64: 8, 1>}, {pipeline_mode = #tpu.pipeline_mode<synchronous>, transform_indices = @transform_3, window_bounds = array<i64: 16, 8>}, {pipeline_mode = #tpu.pipeline_mode<synchronous>, transform_indices = @transform_4, window_bounds = array<i64: 16, 1>}, {pipeline_mode = #tpu.pipeline_mode<synchronous>, transform_indices = @transform_5, window_bounds = array<i64: 8, 16>}, {pipeline_mode = #tpu.pipeline_mode<synchronous>, transform_indices = @transform_6, window_bounds = array<i64: 8, 1>}, {transform_indices = @transform_7, window_bounds = array<i64: 8, 128>}]} {
    %c0 = arith.constant 0 : index
    %c0_0 = arith.constant 0 : index
    %0 = vector.load %arg1[%c0, %c0_0] : memref<36x128xbf16, #tpu.memory_space<vmem>>, vector<36x128xbf16>
    %c0_1 = arith.constant 0 : index
    %c0_2 = arith.constant 0 : index
    %1 = vector.load %arg2[%c0_1, %c0_2] : memref<8x36xbf16, #tpu.memory_space<vmem>>, vector<8x36xbf16>
    %cst = arith.constant dense<0.000000e+00> : vector<8x128xf32>
    %2 = tpu.matmul %1, %0, %cst {dimension_numbers = #tpu.dot_dimension_numbers<[1], [0], [0], [1], [0, 0, 1, 1], [], []>} : vector<8x36xbf16>, vector<36x128xbf16>, vector<8x128xf32> -> vector<8x128xf32>
    %c0_3 = arith.constant 0 : index
    %c0_4 = arith.constant 0 : index
    %3 = vector.load %arg3[%c0_3, %c0_4] : memref<8x1xf32, #tpu.memory_space<vmem>>, vector<8x1xf32>
    %4 = vector.broadcast %3 : vector<8x1xf32> to vector<8x128xf32>
    %5 = arith.addf %2, %4 : vector<8x128xf32>
    %6 = math.absf %5 : vector<8x128xf32>
    %cst_5 = arith.constant 0.000000e+00 : f32
    %7 = vector.broadcast %cst_5 : f32 to vector<8x128xf32>
    %8 = arith.subf %7, %6 : vector<8x128xf32>
    %9 = math.exp %8 : vector<8x128xf32>
    %cst_6 = arith.constant 2.000000e+00 : f32
    %10 = vector.broadcast %cst_6 : f32 to vector<8x128xf32>
    %11 = arith.addf %9, %10 : vector<8x128xf32>
    %12 = arith.mulf %9, %11 : vector<8x128xf32>
    %cst_7 = arith.constant 0.000000e+00 : f32
    %13 = vector.broadcast %cst_7 : f32 to vector<8x128xf32>
    %14 = arith.cmpf oge, %5, %13 : vector<8x128xf32>
    %cst_8 = arith.constant 2.000000e+00 : f32
    %15 = vector.broadcast %cst_8 : f32 to vector<8x128xf32>
    %16 = arith.mulf %15, %9 : vector<8x128xf32>
    %cst_9 = arith.constant 1.000000e+00 : f32
    %17 = vector.broadcast %cst_9 : f32 to vector<8x128xf32>
    %18 = arith.addf %16, %17 : vector<8x128xf32>
    %19 = arith.select %14, %18, %12 : vector<8x128xi1>, vector<8x128xf32>
    %20 = arith.mulf %9, %9 : vector<8x128xf32>
    %21 = arith.addf %12, %20 : vector<8x128xf32>
    %cst_10 = arith.constant 1.000000e+00 : f32
    %22 = vector.broadcast %cst_10 : f32 to vector<8x128xf32>
    %23 = arith.addf %21, %22 : vector<8x128xf32>
    %cst_11 = arith.constant 2.000000e+00 : f32
    %24 = vector.broadcast %cst_11 : f32 to vector<8x128xf32>
    %25 = arith.addf %12, %24 : vector<8x128xf32>
    %26 = arith.select %14, %23, %25 : vector<8x128xi1>, vector<8x128xf32>
    %27 = arith.mulf %5, %19 : vector<8x128xf32>
    %28 = tpu.reciprocal %26 {approx = true} : vector<8x128xf32> -> vector<8x128xf32>
    %29 = arith.mulf %27, %28 : vector<8x128xf32>
    %30 = arith.truncf %29 : vector<8x128xf32> to vector<8x128xbf16>
    %c0_12 = arith.constant 0 : index
    %c0_13 = arith.constant 0 : index
    %31 = vector.load %arg4[%c0_12, %c0_13] : memref<16x8xbf16, #tpu.memory_space<vmem>>, vector<16x8xbf16>
    %cst_14 = arith.constant dense<0.000000e+00> : vector<16x128xf32>
    %32 = tpu.matmul %31, %30, %cst_14 {dimension_numbers = #tpu.dot_dimension_numbers<[1], [0], [0], [1], [0, 0, 1, 1], [], []>} : vector<16x8xbf16>, vector<8x128xbf16>, vector<16x128xf32> -> vector<16x128xf32>
    %c0_15 = arith.constant 0 : index
    %c0_16 = arith.constant 0 : index
    %33 = vector.load %arg5[%c0_15, %c0_16] : memref<16x1xf32, #tpu.memory_space<vmem>>, vector<16x1xf32>
    %34 = vector.broadcast %33 : vector<16x1xf32> to vector<16x128xf32>
    %35 = arith.addf %32, %34 : vector<16x128xf32>
    %36 = math.absf %35 : vector<16x128xf32>
    %cst_17 = arith.constant 0.000000e+00 : f32
    %37 = vector.broadcast %cst_17 : f32 to vector<16x128xf32>
    %38 = arith.subf %37, %36 : vector<16x128xf32>
    %39 = math.exp %38 : vector<16x128xf32>
    %cst_18 = arith.constant 2.000000e+00 : f32
    %40 = vector.broadcast %cst_18 : f32 to vector<16x128xf32>
    %41 = arith.addf %39, %40 : vector<16x128xf32>
    %42 = arith.mulf %39, %41 : vector<16x128xf32>
    %cst_19 = arith.constant 0.000000e+00 : f32
    %43 = vector.broadcast %cst_19 : f32 to vector<16x128xf32>
    %44 = arith.cmpf oge, %35, %43 : vector<16x128xf32>
    %cst_20 = arith.constant 2.000000e+00 : f32
    %45 = vector.broadcast %cst_20 : f32 to vector<16x128xf32>
    %46 = arith.mulf %45, %39 : vector<16x128xf32>
    %cst_21 = arith.constant 1.000000e+00 : f32
    %47 = vector.broadcast %cst_21 : f32 to vector<16x128xf32>
    %48 = arith.addf %46, %47 : vector<16x128xf32>
    %49 = arith.select %44, %48, %42 : vector<16x128xi1>, vector<16x128xf32>
    %50 = arith.mulf %39, %39 : vector<16x128xf32>
    %51 = arith.addf %42, %50 : vector<16x128xf32>
    %cst_22 = arith.constant 1.000000e+00 : f32
    %52 = vector.broadcast %cst_22 : f32 to vector<16x128xf32>
    %53 = arith.addf %51, %52 : vector<16x128xf32>
    %cst_23 = arith.constant 2.000000e+00 : f32
    %54 = vector.broadcast %cst_23 : f32 to vector<16x128xf32>
    %55 = arith.addf %42, %54 : vector<16x128xf32>
    %56 = arith.select %44, %53, %55 : vector<16x128xi1>, vector<16x128xf32>
    %57 = arith.mulf %35, %49 : vector<16x128xf32>
    %58 = tpu.reciprocal %56 {approx = true} : vector<16x128xf32> -> vector<16x128xf32>
    %59 = arith.mulf %57, %58 : vector<16x128xf32>
    %60 = arith.truncf %59 : vector<16x128xf32> to vector<16x128xbf16>
    %c0_24 = arith.constant 0 : index
    %c0_25 = arith.constant 0 : index
    %61 = vector.load %arg6[%c0_24, %c0_25] : memref<8x16xbf16, #tpu.memory_space<vmem>>, vector<8x16xbf16>
    %cst_26 = arith.constant dense<0.000000e+00> : vector<8x128xf32>
    %62 = tpu.matmul %61, %60, %cst_26 {dimension_numbers = #tpu.dot_dimension_numbers<[1], [0], [0], [1], [0, 0, 1, 1], [], []>} : vector<8x16xbf16>, vector<16x128xbf16>, vector<8x128xf32> -> vector<8x128xf32>
    %c0_27 = arith.constant 0 : index
    %c0_28 = arith.constant 0 : index
    %63 = vector.load %arg7[%c0_27, %c0_28] : memref<8x1xf32, #tpu.memory_space<vmem>>, vector<8x1xf32>
    %64 = vector.broadcast %63 : vector<8x1xf32> to vector<8x128xf32>
    %65 = arith.addf %62, %64 : vector<8x128xf32>
    %66 = math.absf %65 : vector<8x128xf32>
    %cst_29 = arith.constant 0.000000e+00 : f32
    %67 = vector.broadcast %cst_29 : f32 to vector<8x128xf32>
    %68 = arith.subf %67, %66 : vector<8x128xf32>
    %69 = math.exp %68 : vector<8x128xf32>
    %cst_30 = arith.constant 2.000000e+00 : f32
    %70 = vector.broadcast %cst_30 : f32 to vector<8x128xf32>
    %71 = arith.addf %69, %70 : vector<8x128xf32>
    %72 = arith.mulf %69, %71 : vector<8x128xf32>
    %cst_31 = arith.constant 0.000000e+00 : f32
    %73 = vector.broadcast %cst_31 : f32 to vector<8x128xf32>
    %74 = arith.cmpf oge, %65, %73 : vector<8x128xf32>
    %cst_32 = arith.constant 2.000000e+00 : f32
    %75 = vector.broadcast %cst_32 : f32 to vector<8x128xf32>
    %76 = arith.mulf %75, %69 : vector<8x128xf32>
    %cst_33 = arith.constant 1.000000e+00 : f32
    %77 = vector.broadcast %cst_33 : f32 to vector<8x128xf32>
    %78 = arith.addf %76, %77 : vector<8x128xf32>
    %79 = arith.select %74, %78, %72 : vector<8x128xi1>, vector<8x128xf32>
    %80 = arith.mulf %69, %69 : vector<8x128xf32>
    %81 = arith.addf %72, %80 : vector<8x128xf32>
    %cst_34 = arith.constant 1.000000e+00 : f32
    %82 = vector.broadcast %cst_34 : f32 to vector<8x128xf32>
    %83 = arith.addf %81, %82 : vector<8x128xf32>
    %cst_35 = arith.constant 2.000000e+00 : f32
    %84 = vector.broadcast %cst_35 : f32 to vector<8x128xf32>
    %85 = arith.addf %72, %84 : vector<8x128xf32>
    %86 = arith.select %74, %83, %85 : vector<8x128xi1>, vector<8x128xf32>
    %87 = arith.mulf %65, %79 : vector<8x128xf32>
    %88 = tpu.reciprocal %86 {approx = true} : vector<8x128xf32> -> vector<8x128xf32>
    %89 = arith.mulf %87, %88 : vector<8x128xf32>
    %c0_36 = arith.constant 0 : index
    %c0_37 = arith.constant 0 : index
    %90 = vector.load %arg8[%c0_36, %c0_37] : memref<8x128xf32, #tpu.memory_space<vmem>>, vector<8x128xf32>
    tpu.vector_store %arg8[%c0_36, %c0_37], %89 {strides = array<i32>} : memref<8x128xf32, #tpu.memory_space<vmem>>, vector<8x128xf32>,
    return
  }
  func.func @transform_0(%arg0: i32) -> (i32, i32) {
    %c0_i32 = arith.constant 0 : i32
    %c0_i32_0 = arith.constant 0 : i32
    return %c0_i32, %arg0 : i32, i32
  }
  func.func @transform_1(%arg0: i32) -> (i32, i32) {
    %c0_i32 = arith.constant 0 : i32
    %c0_i32_0 = arith.constant 0 : i32
    %c0_i32_1 = arith.constant 0 : i32
    return %c0_i32, %c0_i32_0 : i32, i32
  }
  func.func @transform_2(%arg0: i32) -> (i32, i32) {
    %c0_i32 = arith.constant 0 : i32
    %c0_i32_0 = arith.constant 0 : i32
    %c0_i32_1 = arith.constant 0 : i32
    return %c0_i32, %c0_i32_0 : i32, i32
  }
  func.func @transform_3(%arg0: i32) -> (i32, i32) {
    %c0_i32 = arith.constant 0 : i32
    %c0_i32_0 = arith.constant 0 : i32
    %c0_i32_1 = arith.constant 0 : i32
    return %c0_i32, %c0_i32_0 : i32, i32
  }
  func.func @transform_4(%arg0: i32) -> (i32, i32) {
    %c0_i32 = arith.constant 0 : i32
    %c0_i32_0 = arith.constant 0 : i32
    %c0_i32_1 = arith.constant 0 : i32
    return %c0_i32, %c0_i32_0 : i32, i32
  }
  func.func @transform_5(%arg0: i32) -> (i32, i32) {
    %c0_i32 = arith.constant 0 : i32
    %c0_i32_0 = arith.constant 0 : i32
    %c0_i32_1 = arith.constant 0 : i32
    return %c0_i32, %c0_i32_0 : i32, i32
  }
  func.func @transform_6(%arg0: i32) -> (i32, i32) {
    %c0_i32 = arith.constant 0 : i32
    %c0_i32_0 = arith.constant 0 : i32
    %c0_i32_1 = arith.constant 0 : i32
    return %c0_i32, %c0_i32_0 : i32, i32
  }
  func.func @transform_7(%arg0: i32) -> (i32, i32) {
    %c0_i32 = arith.constant 0 : i32
    %c0_i32_0 = arith.constant 0 : i32
    return %c0_i32, %arg0 : i32, i32
  }
}

</mosaic_0001>

<bundles_post_ra>
// kernel: tpu_custom_call.1
= control target key start
LH: loop header
LB: loop body
LE: loop exit
PB: predicated region body
PF: predicated region fallthrough
CT: control target
= control target key end

     0   :  { %vm59_vm0 = vcmask 1041408   ;;  %v296_v3 = vmov 0   ;;  %s371_s0 = inlined_call_operand.vmem [shape: bf16[36,128], index: 0, kind: input, shape index: {}]   ;;  %s372_s1 = inlined_call_operand.vmem [shape: bf16[8,36], index: 1, kind: input, shape index: {}]   ;;  %s373_s2 = inlined_call_operand.vmem [shape: f32[8,1], index: 2, kind: input, shape index: {}]   ;;  %s374_s3 = inlined_call_operand.vmem [shape: bf16[16,8], index: 3, kind: input, shape index: {}]   ;;  %s375_s4 = inlined_call_operand.vmem [shape: f32[16,1], index: 4, kind: input, shape index: {}]   ;;  %s376_s5 = inlined_call_operand.vmem [shape: bf16[8,16], index: 5, kind: input, shape index: {}]   ;;  %s377_s6 = inlined_call_operand.vmem [shape: f32[8,1], index: 6, kind: input, shape index: {}]   ;;  %s378_s7 = inlined_call_operand.hbm [shape: f32[8,128], index: 7, kind: output, shape index: {}]  }
   0x1   :  { %v32_v0 = vld [vmem:[%s371_s0 + $0x10] sm:$0x3]  ;;  %v34_v2 = vld [vmem:[%s373_s2] sm:$0xff]  ;;  %252 = vset.pattern.permute.xlu0 %v296_v3  ;;  %253 = vset.pattern.permute.xlu1 %v296_v3 }
   0x2   :  { %v49_v1 = vunpack.c.l.b16 %v32_v0 }
   0x3   :  { %12 = vsyncpa [#allocation3], 0  ;;  %37 = vperm.xlu0 %252, %v34_v2   ;;  %v248_v6 = vld [vmem:[%s371_s0 + $0x8] sm:$0xff]  ;;  %v97_v7 = vld [vmem:[%s375_s4] sm:$0xff]  ;;  %vm55_vm1 = vcmask 293888   ;;  %vm118_vm3 = vcmask 1043456  }
   0x4   :  { %v52_v4 = vpack.c.b16 %v49_v1, %v49_v1  ;;  %v247_v8 = vld [vmem:[%s371_s0] sm:$0xff]  ;;  %v98_v17 = vld [vmem:[%s375_s4 + $0x8] sm:$0xff]  ;;  %vm114_vm4 = vcmask 64512   ;;  %vm180_vm7 = vcmask 130048   ;;  %s223_s18 = sshll.u32 %s378_s7, 4  ;;  %s224_s18 = int_to_ptr.hbm [resolvable:$true] %s223_s18 }
   0x5   :  { %v33_v9 = vld [vmem:[%s372_s1] sm:$0xf]  ;;  %106 = vperm.xlu1 %253, %v98_v17  }
   0x6   :  { %v61_v5 = vsel %vm59_vm0, %v52_v4, 0  ;;  %v174_v18 = vld [vmem:[%s377_s6] sm:$0xff] }
   0x7   :  { %68 = vmatpush.bf16.msra.mxu0 %v61_v5  ;;  %v249_v35 = vld [vmem:[%s374_s3] sm:$0xff] }
   0xb   :  { %69 = vmatpush.bf16.msra.mxu0 %v248_v6  ;;  %101 = vperm.xlu0 %252, %v97_v7  }
   0xd   :  { %177 = vperm.xlu1 %253, %v174_v18  }
   0xf   :  { %70 = vmatpush.bf16.msra.mxu0 %v247_v8 }
  0x12   :  { %240 = vmatmul.msk.bf16.vlgmr.msra.gmra.mxu0 %vm55_vm1, %v33_v9 }
  0x75   :  { %v38_v10 = vpop.permute.xlu0 %37 }
  0x77   :  { %v107_v42 = vpop.permute.xlu1 %106 }
  0x7d   :  { %v102_v36 = vpop.permute.xlu0 %101 }
  0x8f   :  { %v72_v11 = vpop.f32.mrf.mxu0 }
  0x90   :  { %v73_v12 = vadd.f32 %v72_v11, %v38_v10 }
  0x92   :  { %v76_v13 = vand.u32 2147483647, %v73_v12  ;;  %vm82_vm2 = vcmp.ge.f32.partialorder %v73_v12, 0.0 }
  0x94   :  { %v77_v14 = vsub.f32 0.0, %v76_v13  ;;  %v173_v13 = vld [vmem:[%s376_s5] sm:$0xf]  ;;  %s297_s5 = smov [#allocation2]  }
  0x95   :  { %s221_s15 = sshll.u32 %s297_s5, 4  ;;  %s222_s15 = int_to_ptr.vmem [resolvable:$true] %s221_s15 }
  0x96   :  { %v78_v15 = vmul.f32 1.442695, %v77_v14  ;;  %v178_v14 = vpop.permute.xlu1 %177 }
  0x97   :  { %v74_v16 = vpop.f32.mrf.mxu0 }
  0x98   :  { %254 = vpow2.f32 %v78_v15 }
  0x9e   :  { %v255_v19 = vpop.eup %254 }
  0x9f   :  { %v80_v20 = vadd.f32 2.0, %v255_v19  ;;  %v86_v22 = vmul.f32 %v255_v19, %v255_v19  ;;  %v83_v23 = vmul.f32 2.0, %v255_v19 }
  0xa1   :  { %v81_v21 = vmul.f32 %v255_v19, %v80_v20  ;;  %v84_v27 = vadd.f32 1.0, %v83_v23 }
  0xa3   :  { %v87_v24 = vadd.f32 %v86_v22, %v81_v21  ;;  %v89_v26 = vadd.f32 2.0, %v81_v21  ;;  %v85_v29 = vsel %vm82_vm2, %v84_v27, %v81_v21 }
  0xa4   :  { %v91_v30 = vmul.f32 %v85_v29, %v73_v12 }
  0xa5   :  { %v88_v25 = vadd.f32 1.0, %v87_v24 }
  0xa7   :  { %v90_v28 = vsel %vm82_vm2, %v88_v25, %v89_v26 }
  0xa8   :  { %256 = vrcp.f32 %v90_v28 }
  0xae   :  { %v257_v31 = vpop.eup %256 }
  0xaf   :  { %v93_v32 = vmul.f32 %v257_v31, %v91_v30 }
  0xb1   :  { %v94_v33 = vpack.c.bf16 %v93_v32, %v93_v32 }
  0xb3   :  { %v120_v34 = vsel %vm118_vm3, %v94_v33, 0 }
  0xb4   :  { %129 = vmatpush.bf16.msra.mxu1 %v120_v34 }
  0xb7   :  { %245 = vmatmul.msk.bf16.vlgmr.msra.gmra.mxu1 %vm114_vm4, %v249_v35 }
 0x134   :  { %v131_v37 = vpop.f32.mrf.mxu1 }
 0x135   :  { %v132_v38 = vadd.f32 %v131_v37, %v102_v36 }
 0x137   :  { %v136_v39 = vand.u32 2147483647, %v132_v38  ;;  %vm148_vm5 = vcmp.ge.f32.partialorder %v132_v38, 0.0 }
 0x139   :  { %v138_v40 = vsub.f32 0.0, %v136_v39 }
 0x13b   :  { %v140_v41 = vmul.f32 1.442695, %v138_v40 }
 0x13c   :  { %v133_v43 = vpop.f32.mrf.mxu1 }
 0x13d   :  { %258 = vpow2.f32 %v140_v41  ;;  %v134_v44 = vadd.f32 %v133_v43, %v107_v42 }
 0x13f   :  { %v137_v45 = vand.u32 2147483647, %v134_v44  ;;  %vm149_vm6 = vcmp.ge.f32.partialorder %v134_v44, 0.0 }
 0x141   :  { %v139_v46 = vsub.f32 0.0, %v137_v45 }
 0x143   :  { %v259_v47 = vpop.eup %258  ;;  %v142_v48 = vmul.f32 1.442695, %v139_v46 }
 0x144   :  { %v144_v49 = vadd.f32 2.0, %v259_v47  ;;  %v156_v51 = vmul.f32 %v259_v47, %v259_v47  ;;  %v150_v59 = vmul.f32 2.0, %v259_v47 }
 0x145   :  { %260 = vpow2.f32 %v142_v48 }
 0x146   :  { %v146_v50 = vmul.f32 %v259_v47, %v144_v49  ;;  %v152_v1 = vadd.f32 1.0, %v150_v59 }
 0x148   :  { %v158_v52 = vadd.f32 %v156_v51, %v146_v50  ;;  %v162_v56 = vadd.f32 2.0, %v146_v50  ;;  %v154_v4 = vsel %vm148_vm5, %v152_v1, %v146_v50 }
 0x149   :  { %v166_v7 = vmul.f32 %v154_v4, %v132_v38 }
 0x14a   :  { %v160_v54 = vadd.f32 1.0, %v158_v52 }
 0x14b   :  { %v261_v53 = vpop.eup %260 }
 0x14c   :  { %v145_v55 = vadd.f32 2.0, %v261_v53  ;;  %v157_v58 = vmul.f32 %v261_v53, %v261_v53  ;;  %v151_v60 = vmul.f32 2.0, %v261_v53  ;;  %v164_v61 = vsel %vm148_vm5, %v160_v54, %v162_v56 }
 0x14d   :  { %262 = vrcp.f32 %v164_v61 }
 0x14e   :  { %v147_v57 = vmul.f32 %v261_v53, %v145_v55  ;;  %v153_v2 = vadd.f32 1.0, %v151_v60 }
 0x150   :  { %v159_v62 = vadd.f32 %v157_v58, %v147_v57  ;;  %v163_v0 = vadd.f32 2.0, %v147_v57  ;;  %v155_v5 = vsel %vm149_vm6, %v153_v2, %v147_v57 }
 0x151   :  { %v167_v8 = vmul.f32 %v155_v5, %v134_v44 }
 0x152   :  { %v161_v63 = vadd.f32 1.0, %v159_v62 }
 0x153   :  { %v263_v6 = vpop.eup %262 }
 0x154   :  { %v165_v3 = vsel %vm149_vm6, %v161_v63, %v163_v0  ;;  %v170_v10 = vmul.f32 %v263_v6, %v166_v7 }
 0x155   :  { %264 = vrcp.f32 %v165_v3 }
 0x15b   :  { %v265_v9 = vpop.eup %264 }
 0x15c   :  { %v171_v11 = vmul.f32 %v265_v9, %v167_v8 }
 0x15e   :  { %v172_v12 = vpack.c.bf16 %v171_v11, %v170_v10 }
 0x160   :  { %191 = vmatpush.bf16.msra.mxu2 %v172_v12 }
 0x163   :  { %246 = vmatmul.msk.bf16.vlgmr.msra.gmra.mxu2 %vm180_vm7, %v173_v13 }
 0x1e6   :  { %v193_v15 = vpop.f32.mrf.mxu2 }
 0x1e7   :  { %v194_v16 = vadd.f32 %v193_v15, %v178_v14 }
 0x1e9   :  { %v197_v17 = vand.u32 2147483647, %v194_v16  ;;  %vm203_vm8 = vcmp.ge.f32.partialorder %v194_v16, 0.0 }
 0x1eb   :  { %v198_v18 = vsub.f32 0.0, %v197_v17 }
 0x1ed   :  { %v199_v19 = vmul.f32 1.442695, %v198_v18 }
 0x1ee   :  { %v195_v20 = vpop.f32.mrf.mxu2 }
 0x1ef   :  { %266 = vpow2.f32 %v199_v19 }
 0x1f5   :  { %v267_v21 = vpop.eup %266 }
 0x1f6   :  { %v201_v22 = vadd.f32 2.0, %v267_v21  ;;  %v207_v24 = vmul.f32 %v267_v21, %v267_v21  ;;  %v204_v25 = vmul.f32 2.0, %v267_v21 }
 0x1f8   :  { %v202_v23 = vmul.f32 %v267_v21, %v201_v22  ;;  %v205_v29 = vadd.f32 1.0, %v204_v25 }
 0x1fa   :  { %v208_v26 = vadd.f32 %v207_v24, %v202_v23  ;;  %v210_v28 = vadd.f32 2.0, %v202_v23  ;;  %v206_v31 = vsel %vm203_vm8, %v205_v29, %v202_v23 }
 0x1fb   :  { %v212_v32 = vmul.f32 %v206_v31, %v194_v16 }
 0x1fc   :  { %v209_v27 = vadd.f32 1.0, %v208_v26 }
 0x1fe   :  { %v211_v30 = vsel %vm203_vm8, %v209_v27, %v210_v28 }
 0x1ff   :  { %268 = vrcp.f32 %v211_v30 }
 0x205   :  { %v269_v33 = vpop.eup %268 }
 0x206   :  { %v214_v34 = vmul.f32 %v269_v33, %v212_v32 }
 0x208   :  { %215 = vst [vmem:[#allocation2] sm:$0xff] %v214_v34 }
 0x209   :  { %226 = dma.vmem_to_hbm [thread:$0]  %s222_s15, 128, %s224_s18, [#allocation3]  }
 0x20a   :  { %294 = dma.done.wait [#allocation3], 128  }
 0x20b   :  { %295 = vsyncadd [#allocation3], 4294967168 }
 0x20c   :  { %231 = vsyncpa [#allocation3], 1 }

</bundles_post_ra>
